<compile_context>
chip_gen: v6e
topology: v6e:2x2x1
jax: 0.10.0
libtpu: 0.0.40
codegen_flags: <defaults>
</compile_context>

<pallas_src>
import math

import jax
import jax.numpy as jnp
from jax.experimental import pallas as pl
from jax.experimental.pallas import tpu as pltpu

HID1 = 128
HID2 = 64
OUT = 1


def _round_up(x, m):
    return ((x + m - 1) // m) * m


def _max_tile_b():
    # Scoped-VMEM defaults: 16 MiB on v5e, 32 MiB on v6e/v7x. Working set is
    # ~4 KiB per batch row (lane-padded), so cap at 4096 / 8192 rows.
    try:
        kind = jax.devices()[0].device_kind.lower()
    except Exception:
        kind = ""
    if "v6" in kind or "v7" in kind:
        return 8192
    return 4096  # v5e / unknown generation: conservative


def _valuenet_kernel(x_ref, w1_ref, b1_ref, w2_ref, b2_ref, w3_ref, b3_ref, o_ref):
    # fc1 / fc2 on the MXU (bf16 inputs, f32 accumulation); fc3 on the VPU/XLU.
    x = x_ref[...]
    if x.dtype != jnp.bfloat16:        # trace-time branch: skip cast for bf16 x
        x = x.astype(jnp.bfloat16)
    # bf16 cast fused into the ReLU so only one h1 materialization stays live.
    h1 = jnp.maximum(
        jnp.dot(x, w1_ref[...], preferred_element_type=jnp.float32) + b1_ref[...],
        0.0).astype(jnp.bfloat16)
    h2 = jnp.maximum(
        jnp.dot(h1, w2_ref[...], preferred_element_type=jnp.float32) + b2_ref[...],
        0.0)
    # fc3: N=1 -> broadcast-multiply + lane reduce (keeps the MXU out of it).
    o = jnp.sum(h2 * w3_ref[...], axis=-1, keepdims=True) + b3_ref[0, 0]
    o_ref[...] = o.astype(o_ref.dtype)


def value_net_forward(x, params):
    """x: [B, state_dim] float32 or bfloat16 -> [B, 1] float32."""
    w1, b1, w2, b2, w3, b3 = params
    B, state_dim = x.shape

    sublane = 16 if x.dtype == jnp.bfloat16 else 8
    # >=2 grid steps whenever B allows it -> both v7x TensorCores get work;
    # harmless on 1-TC v5e/v6e.
    tile_b = min(_max_tile_b(), _round_up(pl.cdiv(B, 2), sublane))
    grid = (pl.cdiv(B, tile_b),)

    const = lambda i: (0, 0)  # same block every step -> weights stay VMEM-resident

    return pl.pallas_call(
        _valuenet_kernel,
        grid=grid,
        in_specs=[
            pl.BlockSpec((tile_b, state_dim), lambda i: (i, 0)),  # x (streamed)
            pl.BlockSpec((state_dim, HID1), const),               # w1 (bf16)
            pl.BlockSpec((1, HID1), const),                       # b1 (f32)
            pl.BlockSpec((HID1, HID2), const),                    # w2 (bf16)
            pl.BlockSpec((1, HID2), const),                       # b2 (f32)
            pl.BlockSpec((1, HID2), const),                       # w3 row (f32)
            pl.BlockSpec(memory_space=pltpu.MemorySpace.SMEM),    # b3 scalar
        ],
        out_specs=pl.BlockSpec((tile_b, OUT), lambda i: (i, 0)),
        out_shape=jax.ShapeDtypeStruct((B, OUT), jnp.float32),
        compiler_params=pltpu.CompilerParams(
            dimension_semantics=("parallel",),
        ),
    )(x, w1, b1, w2, b2, w3, b3)


def init_params(key, state_dim):
    """Mimics torch.nn.Linear default init: U[-1/sqrt(fan_in), 1/sqrt(fan_in)].

    Weights stored [in, out]; w1/w2 cast to bf16 (MXU path), w3/biases kept f32.
    """
    ks = jax.random.split(key, 6)

    def lin(kw, kb, fan_in, fan_out):
        bound = 1.0 / math.sqrt(fan_in)
        w = jax.random.uniform(kw, (fan_in, fan_out), jnp.float32, -bound, bound)
        b = jax.random.uniform(kb, (1, fan_out), jnp.float32, -bound, bound)
        return w, b

    w1, b1 = lin(ks[0], ks[1], state_dim, HID1)
    w2, b2 = lin(ks[2], ks[3], HID1, HID2)
    w3, b3 = lin(ks[4], ks[5], HID2, OUT)
    w3 = w3.reshape(1, HID2)   # row vector for the VPU fc3 reduce
    b3 = b3.reshape(1, 1)      # SMEM scalar
    return (w1.astype(jnp.bfloat16), b1, w2.astype(jnp.bfloat16), b2, w3, b3)


def _reference(x, params):
    # Mirrors the kernel's precision choices (bf16 matmul inputs, f32 accumulation).
    w1, b1, w2, b2, w3, b3 = params
    h1 = jnp.maximum(
        jnp.dot(x.astype(jnp.bfloat16), w1, preferred_element_type=jnp.float32) + b1,
        0.0)
    h2 = jnp.maximum(
        jnp.dot(h1.astype(jnp.bfloat16), w2, preferred_element_type=jnp.float32) + b2,
        0.0)
    return jnp.sum(h2 * w3, axis=-1, keepdims=True) + b3[0, 0]


def _reference_f32(x, params):
    # Full-f32 semantics of the PyTorch module (weights already rounded to bf16
    # at init; activations kept f32 throughout).
    w1, b1, w2, b2, w3, b3 = params
    h1 = jnp.maximum(jnp.dot(x, w1.astype(jnp.float32)) + b1, 0.0)
    h2 = jnp.maximum(jnp.dot(h1, w2.astype(jnp.float32)) + b2, 0.0)
    return jnp.sum(h2 * w3, axis=-1, keepdims=True) + b3[0, 0]


if __name__ == "__main__":
    key = jax.random.PRNGKey(0)
    k_params, k_x1, k_x2 = jax.random.split(key, 3)

    state_dim = 32
    params = init_params(k_params, state_dim)

    # Small single-tile case (typical PPO rollout minibatch).
    x_small = jax.random.normal(k_x1, (8, state_dim), jnp.float32)
    out_small = jax.block_until_ready(value_net_forward(x_small, params))
    assert out_small.shape == (8, 1), out_small.shape
    assert jnp.allclose(out_small, _reference(x_small, params), atol=1e-3, rtol=1e-3)

    # Multi-tile case with a partial last tile (exercises the batch grid /
    # >=2 grid steps used for the v7x core split).
    x_big = jax.random.normal(k_x2, (200, state_dim), jnp.float32)
    out_big = jax.block_until_ready(value_net_forward(x_big, params))
    assert out_big.shape == (200, 1), out_big.shape
    assert jnp.allclose(out_big, _reference(x_big, params), atol=1e-3, rtol=1e-3)

    # bf16-x producer path (16-sublane tiling, no in-kernel cast): bit-compatible
    # with the f32-x path since the kernel casts x to bf16 anyway.
    out_bf16 = jax.block_until_ready(
        value_net_forward(x_big.astype(jnp.bfloat16), params))
    assert jnp.allclose(out_bf16, out_big, atol=1e-5, rtol=1e-5)

    # Sanity vs. the all-f32 PyTorch semantics (bf16 matmul inputs add ~1e-2
    # relative drift -- acceptable for a PPO value head).
    assert jnp.allclose(out_big, _reference_f32(x_big, params), atol=5e-2, rtol=5e-2)

    print("KERNEL_OK")
</pallas_src>

<mosaic_0001>
module attributes {stable_mosaic.version = 11 : i64} {
  func.func @_valuenet_kernel(%arg0: i32, %arg1: memref<8x32xf32, #tpu.memory_space<vmem>>, %arg2: memref<32x128xbf16, #tpu.memory_space<vmem>>, %arg3: memref<1x128xf32, #tpu.memory_space<vmem>>, %arg4: memref<128x64xbf16, #tpu.memory_space<vmem>>, %arg5: memref<1x64xf32, #tpu.memory_space<vmem>>, %arg6: memref<1x64xf32, #tpu.memory_space<vmem>>, %arg7: memref<1x1xf32, #tpu.memory_space<smem>>, %arg8: memref<8x1xf32, #tpu.memory_space<vmem>>) attributes {dimension_semantics = [#tpu.dimension_semantics<parallel>], iteration_bounds = array<i64: 1>, scalar_prefetch = 0 : i64, scratch_operands = 0 : i64, tpu.core_type = #tpu.core_type<tc>, window_params = [{transform_indices = @transform_0, window_bounds = array<i64: 8, 32>}, {pipeline_mode = #tpu.pipeline_mode<synchronous>, transform_indices = @transform_1, window_bounds = array<i64: 32, 128>}, {pipeline_mode = #tpu.pipeline_mode<synchronous>, transform_indices = @transform_2, window_bounds = array<i64: 1, 128>}, {pipeline_mode = #tpu.pipeline_mode<synchronous>, transform_indices = @transform_3, window_bounds = array<i64: 128, 64>}, {pipeline_mode = #tpu.pipeline_mode<synchronous>, transform_indices = @transform_4, window_bounds = array<i64: 1, 64>}, {pipeline_mode = #tpu.pipeline_mode<synchronous>, transform_indices = @transform_5, window_bounds = array<i64: 1, 64>}, {transform_indices = @transform_6, window_bounds = array<i64: 1, 1>}, {transform_indices = @transform_7, window_bounds = array<i64: 8, 1>}]} {
    %c0 = arith.constant 0 : index
    %c0_0 = arith.constant 0 : index
    %0 = vector.load %arg1[%c0, %c0_0] : memref<8x32xf32, #tpu.memory_space<vmem>>, vector<8x32xf32>
    %1 = arith.truncf %0 : vector<8x32xf32> to vector<8x32xbf16>
    %c0_1 = arith.constant 0 : index
    %c0_2 = arith.constant 0 : index
    %2 = vector.load %arg2[%c0_1, %c0_2] : memref<32x128xbf16, #tpu.memory_space<vmem>>, vector<32x128xbf16>
    %cst = arith.constant dense<0.000000e+00> : vector<8x128xf32>
    %3 = tpu.matmul %1, %2, %cst {dimension_numbers = #tpu.dot_dimension_numbers<[1], [0], [0], [1], [0, 0, 1, 1], [], []>} : vector<8x32xbf16>, vector<32x128xbf16>, vector<8x128xf32> -> vector<8x128xf32>
    %c0_3 = arith.constant 0 : index
    %c0_4 = arith.constant 0 : index
    %4 = vector.load %arg3[%c0_3, %c0_4] : memref<1x128xf32, #tpu.memory_space<vmem>>, vector<1x128xf32>
    %5 = vector.broadcast %4 : vector<1x128xf32> to vector<8x128xf32>
    %6 = arith.addf %3, %5 : vector<8x128xf32>
    %cst_5 = arith.constant 0.000000e+00 : f32
    %7 = vector.broadcast %cst_5 : f32 to vector<8x128xf32>
    %8 = arith.maximumf %6, %7 : vector<8x128xf32>
    %9 = arith.truncf %8 : vector<8x128xf32> to vector<8x128xbf16>
    %c0_6 = arith.constant 0 : index
    %c0_7 = arith.constant 0 : index
    %10 = vector.load %arg4[%c0_6, %c0_7] : memref<128x64xbf16, #tpu.memory_space<vmem>>, vector<128x64xbf16>
    %cst_8 = arith.constant dense<0.000000e+00> : vector<8x64xf32>
    %11 = tpu.matmul %9, %10, %cst_8 {dimension_numbers = #tpu.dot_dimension_numbers<[1], [0], [0], [1], [0, 0, 1, 1], [], []>} : vector<8x128xbf16>, vector<128x64xbf16>, vector<8x64xf32> -> vector<8x64xf32>
    %c0_9 = arith.constant 0 : index
    %c0_10 = arith.constant 0 : index
    %12 = vector.load %arg5[%c0_9, %c0_10] : memref<1x64xf32, #tpu.memory_space<vmem>>, vector<1x64xf32>
    %13 = vector.broadcast %12 : vector<1x64xf32> to vector<8x64xf32>
    %14 = arith.addf %11, %13 : vector<8x64xf32>
    %cst_11 = arith.constant 0.000000e+00 : f32
    %15 = vector.broadcast %cst_11 : f32 to vector<8x64xf32>
    %16 = arith.maximumf %14, %15 : vector<8x64xf32>
    %c0_12 = arith.constant 0 : index
    %c0_13 = arith.constant 0 : index
    %17 = vector.load %arg6[%c0_12, %c0_13] : memref<1x64xf32, #tpu.memory_space<vmem>>, vector<1x64xf32>
    %18 = vector.broadcast %17 : vector<1x64xf32> to vector<8x64xf32>
    %19 = arith.mulf %16, %18 : vector<8x64xf32>
    %cst_14 = arith.constant dense<0.000000e+00> : vector<8xf32>
    %20 = vector.multi_reduction <add>, %19, %cst_14 [1] : vector<8x64xf32> to vector<8xf32>
    %21 = vector.shape_cast %20 : vector<8xf32> to vector<8x1xf32>
    %c0_15 = arith.constant 0 : index
    %c0_16 = arith.constant 0 : index
    %22 = memref.load %arg7[%c0_15, %c0_16] : memref<1x1xf32, #tpu.memory_space<smem>>
    %23 = vector.broadcast %22 : f32 to vector<8x1xf32>
    %24 = arith.addf %21, %23 : vector<8x1xf32>
    %c0_17 = arith.constant 0 : index
    %c0_18 = arith.constant 0 : index
    %25 = vector.load %arg8[%c0_17, %c0_18] : memref<8x1xf32, #tpu.memory_space<vmem>>, vector<8x1xf32>
    tpu.vector_store %arg8[%c0_17, %c0_18], %24 {strides = array<i32>} : memref<8x1xf32, #tpu.memory_space<vmem>>, vector<8x1xf32>,
    return
  }
  func.func @transform_0(%arg0: i32) -> (i32, i32) {
    %c0_i32 = arith.constant 0 : i32
    %c0_i32_0 = arith.constant 0 : i32
    return %arg0, %c0_i32 : i32, i32
  }
  func.func @transform_1(%arg0: i32) -> (i32, i32) {
    %c0_i32 = arith.constant 0 : i32
    %c0_i32_0 = arith.constant 0 : i32
    %c0_i32_1 = arith.constant 0 : i32
    return %c0_i32, %c0_i32_0 : i32, i32
  }
  func.func @transform_2(%arg0: i32) -> (i32, i32) {
    %c0_i32 = arith.constant 0 : i32
    %c0_i32_0 = arith.constant 0 : i32
    %c0_i32_1 = arith.constant 0 : i32
    return %c0_i32, %c0_i32_0 : i32, i32
  }
  func.func @transform_3(%arg0: i32) -> (i32, i32) {
    %c0_i32 = arith.constant 0 : i32
    %c0_i32_0 = arith.constant 0 : i32
    %c0_i32_1 = arith.constant 0 : i32
    return %c0_i32, %c0_i32_0 : i32, i32
  }
  func.func @transform_4(%arg0: i32) -> (i32, i32) {
    %c0_i32 = arith.constant 0 : i32
    %c0_i32_0 = arith.constant 0 : i32
    %c0_i32_1 = arith.constant 0 : i32
    return %c0_i32, %c0_i32_0 : i32, i32
  }
  func.func @transform_5(%arg0: i32) -> (i32, i32) {
    %c0_i32 = arith.constant 0 : i32
    %c0_i32_0 = arith.constant 0 : i32
    %c0_i32_1 = arith.constant 0 : i32
    return %c0_i32, %c0_i32_0 : i32, i32
  }
  func.func @transform_6(%arg0: i32) -> (i32, i32) {
    %c0_i32 = arith.constant 0 : i32
    %c0_i32_0 = arith.constant 0 : i32
    %c0_i32_1 = arith.constant 0 : i32
    return %c0_i32, %c0_i32_0 : i32, i32
  }
  func.func @transform_7(%arg0: i32) -> (i32, i32) {
    %c0_i32 = arith.constant 0 : i32
    %c0_i32_0 = arith.constant 0 : i32
    return %arg0, %c0_i32 : i32, i32
  }
}

</mosaic_0001>

<bundles_post_ra>
// kernel: tpu_custom_call.1
= control target key start
LH: loop header
LB: loop body
LE: loop exit
PB: predicated region body
PF: predicated region fallthrough
CT: control target
= control target key end

     0   :  { %v298_v0 = vmov 0.0   ;;  %vm299_vm0 = vmmov 0   ;;  %vm53_vm1 = vcmask 261120   ;;  %vm219_vm2 = vcmask 523264   ;;  %s388_s1 = inlined_call_operand.vmem [shape: bf16[32,128], index: 1, kind: input, shape index: {}]   ;;  %s389_s0 = inlined_call_operand.vmem [shape: f32[8,32], index: 0, kind: input, shape index: {}]   ;;  %s390_s3 = inlined_call_operand.vmem [shape: bf16[128,64], index: 3, kind: input, shape index: {}]   ;;  %s391_s2 = inlined_call_operand.vmem [shape: f32[1,128], index: 2, kind: input, shape index: {}]   ;;  %s392_s4 = inlined_call_operand.vmem [shape: f32[1,64], index: 4, kind: input, shape index: {}]   ;;  %s393_s5 = inlined_call_operand.vmem [shape: f32[1,64], index: 5, kind: input, shape index: {}]   ;;  %s394_s6 = inlined_call_operand.<no memory space> [shape: f32[1,1], index: 6, kind: input, shape index: {}]   ;;  %s395_s7 = inlined_call_operand.vmem [shape: f32[8,1], index: 7, kind: output, shape index: {}]  }
   0x1   :  { %258 = vmatprep.subr.bf16.mxu0 %v298_v0  ;;  %v288_v1 = vld [vmem:[%s388_s1 + $0x8] sm:$0xff]   ;;  %262 = vmatprep.mubr.msk.bf16.mxu0 %vm299_vm0, %v298_v0  ;;  %v289_v2 = vld [vmem:[%s388_s1] sm:$0xff]   ;;  %v290_v4 = vld [vmem:[%s390_s3 + $0x38] sm:$0xff]   ;;  %v224_v31 = vstv %s394_s6  ;;  %vm226_vm3 = vcmask 7168  }
   0x2   :  { %266 = vmatprep.subr.bf16.mxu1 %v298_v0  ;;  %282 = vmatprep.mubr.msk.bf16.mxu1 %vm299_vm0, %v298_v0  ;;  %v28_v3 = vld [vmem:[%s389_s0] sm:$0xff]  ;;  %v291_v6 = vld [vmem:[%s390_s3 + $0x30] sm:$0xff]   ;;  %v292_v7 = vld [vmem:[%s390_s3 + $0x28] sm:$0xff]  }
   0x3   :  { %259 = vmatpush3.bf16.msra.mxu0 %v288_v1  ;;  %v29_v5 = vpack.c.bf16 %v28_v3, %v28_v3  ;;  %267 = vmatpush3.bf16.msra.mxu1 %v290_v4  ;;  %v293_v8 = vld [vmem:[%s390_s3 + $0x20] sm:$0xff]   ;;  %v294_v9 = vld [vmem:[%s390_s3 + $0x18] sm:$0xff]   ;;  %v295_v10 = vld [vmem:[%s390_s3 + $0x10] sm:$0xff]  }
   0x4   :  { %260 = vmatprep.subr.bf16.mxu0 %v298_v0  ;;  %268 = vmatprep.subr.bf16.mxu1 %v298_v0  ;;  %v296_v11 = vld [vmem:[%s390_s3 + $0x8] sm:$0xff]   ;;  %v297_v12 = vld [vmem:[%s390_s3] sm:$0xff]  }
   0x5   :  { %v232_v13 = vld [vmem:[%s391_s2] ss:$0 sm:$0xff] }
   0x6   :  { %v236_v21 = vld [vmem:[%s392_s4] ss:$0 sm:$0xff] }
   0x7   :  { %261 = vmatpush3.bf16.msra.mxu0 %v289_v2  ;;  %269 = vmatpush3.bf16.msra.mxu1 %v291_v6  ;;  %v245_v25 = vld [vmem:[%s393_s5] ss:$0 sm:$0xff] }
   0x8   :  { %270 = vmatprep.subr.bf16.mxu1 %v298_v0 }
   0xa   :  { %263 = vmatmul.mubr.msk.bf16.vlgmr.msra.gmra.mxu0 %vm53_vm1, %v29_v5 }
   0xb   :  { %271 = vmatpush3.bf16.msra.mxu1 %v292_v7 }
   0xc   :  { %272 = vmatprep.subr.bf16.mxu1 %v298_v0 }
   0xf   :  { %273 = vmatpush3.bf16.msra.mxu1 %v293_v8 }
  0x10   :  { %274 = vmatprep.subr.bf16.mxu1 %v298_v0 }
  0x13   :  { %275 = vmatpush3.bf16.msra.mxu1 %v294_v9 }
  0x14   :  { %276 = vmatprep.subr.bf16.mxu1 %v298_v0 }
  0x17   :  { %277 = vmatpush3.bf16.msra.mxu1 %v295_v10 }
  0x18   :  { %278 = vmatprep.subr.bf16.mxu1 %v298_v0 }
  0x1b   :  { %279 = vmatpush3.bf16.msra.mxu1 %v296_v11 }
  0x1c   :  { %280 = vmatprep.subr.bf16.mxu1 %v298_v0 }
  0x1f   :  { %281 = vmatpush3.bf16.msra.mxu1 %v297_v12 }
  0xca   :  { %v91_v14 = vpop.f32.mrf.mxu0 }
  0xcb   :  { %v92_v15 = vadd.f32 %v232_v13, %v91_v14 }
  0xcc   :  { %v264_v16 = vpop.f32.mrf.mxu0 }
  0xcd   :  { %v97_v17 = vmax.f32 %v92_v15, 0.0 }
  0xce   :  { %v94_v18 = vpop.f32.mrf.mxu0 }
  0xcf   :  { %v98_v19 = vpack.c.bf16 %v97_v17, %v97_v17 }
  0xd0   :  { %v265_v20 = vpop.f32.mrf.mxu0 }
  0xd1   :  { %283 = vmatmul.mubr.bf16.vlgmr.msra.gmra.mxu1 %v98_v19 }
 0x191   :  { %v204_v22 = vpop.f32.mrf.mxu1 }
 0x192   :  { %v205_v23 = vadd.f32 %v236_v21, %v204_v22 }
 0x193   :  { %v284_v24 = vpop.f32.mrf.mxu1 }
 0x194   :  { %v210_v26 = vmax.f32 %v205_v23, 0.0 }
 0x195   :  { %v207_v27 = vpop.f32.mrf.mxu1 }
 0x196   :  { %v218_v28 = vmul.f32 %v245_v25, %v210_v26 }
 0x197   :  { %v285_v29 = vpop.f32.mrf.mxu1 }
 0x198   :  { %v220_v30 = vsel %vm219_vm2, %v218_v28, 0.0 }
 0x199   :  { %221 = vadd.xlane.f32.xlu0 %v220_v30 }
 0x222   :  { %v222_v32 = vpop.xlane.xlu0 %221 }
 0x223   :  { %v225_v33 = vadd.f32 %v224_v31, %v222_v32 }
 0x225   :  { %227 = vst.msk [vmem:[%s395_s7] sm:$0xff] %vm226_vm3, %v225_v33 }

</bundles_post_ra>
